<compile_context>
chip_gen: v6e
topology: v6e:2x2x1
jax: 0.10.0
libtpu: 0.0.40
codegen_flags: <defaults>
</compile_context>

<pallas_src>
import functools
import math

import jax
import jax.numpy as jnp
from jax.experimental import pallas as pl
from jax.experimental.pallas import tpu as pltpu


def _round_up(x: int, m: int) -> int:
    return (x + m - 1) // m * m


def disc_kernel(hT_ref, cT_ref, wT_ref, b_ref, out_ref, *, negsamp_ratio):
    # hT_ref : (n_h_pad, B_pad)   h_pl, transposed + zero-padded
    # cT_ref : (n_h_pad, B_pad)   c, transposed; last R pad lanes hold the
    #                             wrap-mirror columns c[:, B-1-m], m=1..R
    # wT_ref : (n_h_pad, n_h_pad) bilinear weight, transposed + zero-padded
    # b_ref  : (1,)               bilinear bias (SMEM, f32)
    # out_ref: (1+R, B_pad)       lane-dense per-round scores (f32)

    # Round-invariant projection t^T = (h_pl @ W)^T = W^T @ h_pl^T (MXU, f32 acc).
    tT = jnp.dot(wT_ref[...], hT_ref[...], preferred_element_type=jnp.float32)
    cT = cT_ref[...]

    # Round 0: positive samples.
    out_ref[pl.ds(0, 1), :] = jnp.sum(
        tT * cT.astype(jnp.float32), axis=0, keepdims=True)

    # Negative rounds: independent lane rolls of the base cT (XLU slot; no
    # chained concat copies), one row stored per round.
    for k in range(1, negsamp_ratio + 1):
        c_k = pltpu.roll(cT, k, axis=1)
        out_ref[pl.ds(k, 1), :] = jnp.sum(
            tT * c_k.astype(jnp.float32), axis=0, keepdims=True)

    # Bias added once to the whole (1+R, B_pad) slab (single scalar broadcast).
    out_ref[...] = out_ref[...] + b_ref[0]


def discriminator_forward(c, h_pl, w_bil, b_bil, negsamp_ratio,
                          *, compute_dtype=jnp.bfloat16):
    """JAX/Pallas equivalent of Discriminator.forward(c, h_pl)."""
    B, n_h = c.shape
    R = int(negsamp_ratio)
    R1 = R + 1
    assert B >= 2, "torch's c_mi[-2:-1] slice needs at least 2 rows"
    # Closed-form roll shuffle is valid while the torch shuffle wraps at most
    # once per row, i.e. negsamp_ratio <= B-1 (always true in CoLA configs).
    assert R <= B - 1, "negsamp_ratio must be <= batch-1 for the roll shuffle"
    # TODO(synk): fall back to an iterative shuffle for negsamp_ratio > B-1.

    n_h_pad = _round_up(n_h, 8)
    B_pad = _round_up(B, 128)
    if R > 0 and B_pad - B < R:
        B_pad += 128  # need >= R padding lanes to host the wrap-mirror columns

    cd = compute_dtype
    cT = jnp.zeros((n_h_pad, B_pad), cd).at[:n_h, :B].set(c.T.astype(cd))
    if R > 0:
        # Pad lane B_pad-m mirrors true lane B-1-m (m=1..R): a lane roll by k
        # then reproduces torch's cat((c[-2:-1], c[:-1])) applied k times.
        cT = cT.at[:n_h, B_pad - R:].set(c.T[:, B - 1 - R:B - 1].astype(cd))
    hT = jnp.zeros((n_h_pad, B_pad), cd).at[:n_h, :B].set(h_pl.T.astype(cd))
    wT = jnp.zeros((n_h_pad, n_h_pad), cd).at[:n_h, :n_h].set(
        w_bil.T.astype(cd))
    bias = b_bil.reshape(1).astype(jnp.float32)

    scores_pad = pl.pallas_call(
        functools.partial(disc_kernel, negsamp_ratio=R),
        out_shape=jax.ShapeDtypeStruct((R1, B_pad), jnp.float32),
        in_specs=[
            pl.BlockSpec(memory_space=pltpu.MemorySpace.VMEM),  # hT
            pl.BlockSpec(memory_space=pltpu.MemorySpace.VMEM),  # cT
            pl.BlockSpec(memory_space=pltpu.MemorySpace.VMEM),  # wT
            pl.BlockSpec(memory_space=pltpu.MemorySpace.SMEM),  # bias
        ],
        out_specs=pl.BlockSpec(memory_space=pltpu.MemorySpace.VMEM),
    )(hT, cT, wT, bias)

    # torch.cat(scs) order: [round0 b0..bB-1, round1 b0..bB-1, ...] -> (R1*B, 1)
    return scores_pad[:, :B].reshape(R1 * B, 1)


# ----------------------------------------------------------------------------
# Pure-JAX reference (mirrors the torch module exactly)
# ----------------------------------------------------------------------------
def ref_forward(c, h_pl, w_bil, b_bil, negsamp_ratio, *, precision=None):
    def f_k(h, cc):
        t = jnp.dot(h, w_bil, precision=precision)
        return jnp.sum(t * cc, axis=-1, keepdims=True) + b_bil[0]

    scs = [f_k(h_pl, c)]
    c_mi = c
    for _ in range(negsamp_ratio):
        c_mi = jnp.concatenate([c_mi[-2:-1, :], c_mi[:-1, :]], axis=0)
        scs.append(f_k(h_pl, c_mi))
    return jnp.concatenate(scs, axis=0)


if __name__ == "__main__":
    B = 8              # batch of subgraph readouts / node embeddings
    n_h = 32           # hidden dim of the CoLA model
    negsamp_ratio = 2  # negative-sample rounds

    key = jax.random.PRNGKey(0)
    kc, kh, kw = jax.random.split(key, 3)

    c = jax.random.normal(kc, (B, n_h), jnp.float32)
    h_pl = jax.random.normal(kh, (B, n_h), jnp.float32)

    # nn.Bilinear(n_h, n_h, 1): xavier-uniform weight, zero bias.
    lim = math.sqrt(6.0 / (n_h + n_h))
    w_bil = jax.random.uniform(kw, (n_h, n_h), jnp.float32,
                               minval=-lim, maxval=lim)
    b_bil = jnp.zeros((1,), jnp.float32)

    hi = jax.lax.Precision.HIGHEST
    R1B = (1 + negsamp_ratio) * B

    # 1) f32 path: exact check of the module semantics.
    out_f32 = discriminator_forward(c, h_pl, w_bil, b_bil, negsamp_ratio,
                                    compute_dtype=jnp.float32)
    out_f32 = jax.block_until_ready(out_f32)
    ref_f32 = ref_forward(c, h_pl, w_bil, b_bil, negsamp_ratio, precision=hi)
    assert out_f32.shape == (R1B, 1), out_f32.shape
    assert jnp.allclose(out_f32, ref_f32, atol=1e-4, rtol=1e-4), \
        "f32 path mismatch vs reference"

    # 2) bf16 path (perf default): compare against the same math on
    #    bf16-rounded inputs (products are exact; only accumulation order
    #    differs), so the check stays tight.
    out_bf16 = discriminator_forward(c, h_pl, w_bil, b_bil, negsamp_ratio,
                                     compute_dtype=jnp.bfloat16)
    out_bf16 = jax.block_until_ready(out_bf16)
    to_bf = lambda x: x.astype(jnp.bfloat16).astype(jnp.float32)
    ref_bf16 = ref_forward(to_bf(c), to_bf(h_pl), to_bf(w_bil), b_bil,
                           negsamp_ratio, precision=hi)
    assert out_bf16.shape == (R1B, 1), out_bf16.shape
    assert jnp.allclose(out_bf16, ref_bf16, atol=2e-3, rtol=2e-3), \
        "bf16 path mismatch vs bf16-rounded reference"

    print("KERNEL_OK")
</pallas_src>

<mosaic_0001>
module attributes {stable_mosaic.version = 11 : i64} {
  func.func @disc_kernel(%arg0: memref<32x128xf32, #tpu.memory_space<vmem>>, %arg1: memref<32x128xf32, #tpu.memory_space<vmem>>, %arg2: memref<32x32xf32, #tpu.memory_space<vmem>>, %arg3: memref<1xf32, #tpu.memory_space<smem>>, %arg4: memref<3x128xf32, #tpu.memory_space<vmem>>) attributes {dimension_semantics = [], scalar_prefetch = 0 : i64, scratch_operands = 0 : i64, tpu.core_type = #tpu.core_type<tc>} {
    %c0 = arith.constant 0 : index
    %c0_0 = arith.constant 0 : index
    %0 = vector.load %arg2[%c0, %c0_0] : memref<32x32xf32, #tpu.memory_space<vmem>>, vector<32x32xf32>
    %c0_1 = arith.constant 0 : index
    %c0_2 = arith.constant 0 : index
    %1 = vector.load %arg0[%c0_1, %c0_2] : memref<32x128xf32, #tpu.memory_space<vmem>>, vector<32x128xf32>
    %cst = arith.constant dense<0.000000e+00> : vector<32x128xf32>
    %2 = tpu.matmul %0, %1, %cst {dimension_numbers = #tpu.dot_dimension_numbers<[1], [0], [0], [1], [0, 0, 1, 1], [], []>} : vector<32x32xf32>, vector<32x128xf32>, vector<32x128xf32> -> vector<32x128xf32>
    %c0_3 = arith.constant 0 : index
    %c0_4 = arith.constant 0 : index
    %3 = vector.load %arg1[%c0_3, %c0_4] : memref<32x128xf32, #tpu.memory_space<vmem>>, vector<32x128xf32>
    %4 = arith.mulf %2, %3 : vector<32x128xf32>
    %cst_5 = arith.constant dense<0.000000e+00> : vector<128xf32>
    %5 = vector.multi_reduction <add>, %4, %cst_5 [0] : vector<32x128xf32> to vector<128xf32>
    %6 = vector.shape_cast %5 : vector<128xf32> to vector<1x128xf32>
    %c0_6 = arith.constant 0 : index
    %c0_7 = arith.constant 0 : index
    %7 = vector.load %arg4[%c0_6, %c0_7] : memref<3x128xf32, #tpu.memory_space<vmem>>, vector<1x128xf32>
    tpu.vector_store %arg4[%c0_6, %c0_7], %6 {strides = array<i32>} : memref<3x128xf32, #tpu.memory_space<vmem>>, vector<1x128xf32>,
    %c1_i32 = arith.constant 1 : i32
    %8 = tpu.dynamic_rotate %3 by %c1_i32 dim 1 : vector<32x128xf32>, i32 -> vector<32x128xf32>
    %9 = arith.mulf %2, %8 : vector<32x128xf32>
    %cst_8 = arith.constant dense<0.000000e+00> : vector<128xf32>
    %10 = vector.multi_reduction <add>, %9, %cst_8 [0] : vector<32x128xf32> to vector<128xf32>
    %11 = vector.shape_cast %10 : vector<128xf32> to vector<1x128xf32>
    %c1 = arith.constant 1 : index
    %c0_9 = arith.constant 0 : index
    %12 = vector.load %arg4[%c1, %c0_9] : memref<3x128xf32, #tpu.memory_space<vmem>>, vector<1x128xf32>
    tpu.vector_store %arg4[%c1, %c0_9], %11 {strides = array<i32>} : memref<3x128xf32, #tpu.memory_space<vmem>>, vector<1x128xf32>,
    %c2_i32 = arith.constant 2 : i32
    %13 = tpu.dynamic_rotate %3 by %c2_i32 dim 1 : vector<32x128xf32>, i32 -> vector<32x128xf32>
    %14 = arith.mulf %2, %13 : vector<32x128xf32>
    %cst_10 = arith.constant dense<0.000000e+00> : vector<128xf32>
    %15 = vector.multi_reduction <add>, %14, %cst_10 [0] : vector<32x128xf32> to vector<128xf32>
    %16 = vector.shape_cast %15 : vector<128xf32> to vector<1x128xf32>
    %c2 = arith.constant 2 : index
    %c0_11 = arith.constant 0 : index
    %17 = vector.load %arg4[%c2, %c0_11] : memref<3x128xf32, #tpu.memory_space<vmem>>, vector<1x128xf32>
    tpu.vector_store %arg4[%c2, %c0_11], %16 {strides = array<i32>} : memref<3x128xf32, #tpu.memory_space<vmem>>, vector<1x128xf32>,
    %c0_12 = arith.constant 0 : index
    %c0_13 = arith.constant 0 : index
    %18 = vector.load %arg4[%c0_12, %c0_13] : memref<3x128xf32, #tpu.memory_space<vmem>>, vector<3x128xf32>
    %c0_14 = arith.constant 0 : index
    %19 = memref.load %arg3[%c0_14] : memref<1xf32, #tpu.memory_space<smem>>
    %20 = vector.broadcast %19 : f32 to vector<3x128xf32>
    %21 = arith.addf %18, %20 : vector<3x128xf32>
    %c0_15 = arith.constant 0 : index
    %c0_16 = arith.constant 0 : index
    %22 = vector.load %arg4[%c0_15, %c0_16] : memref<3x128xf32, #tpu.memory_space<vmem>>, vector<3x128xf32>
    tpu.vector_store %arg4[%c0_15, %c0_16], %21 {strides = array<i32>} : memref<3x128xf32, #tpu.memory_space<vmem>>, vector<3x128xf32>,
    return
  }
}

</mosaic_0001>

<bundles_post_ra>
// kernel: tpu_custom_call.1
= control target key start
LH: loop header
LB: loop body
LE: loop exit
PB: predicated region body
PF: predicated region fallthrough
CT: control target
= control target key end

     0   :  { %10 = vsyncpa [#allocation4], 0  ;;  %s425_s0 = inlined_call_operand.hbm [shape: f32[32,128], index: 0, kind: input, shape index: {}]   ;;  %s426_s1 = inlined_call_operand.hbm [shape: f32[32,128], index: 1, kind: input, shape index: {}]   ;;  %s427_s2 = inlined_call_operand.hbm [shape: f32[32,32], index: 2, kind: input, shape index: {}]   ;;  %s428_s3 = inlined_call_operand.<no memory space> [shape: f32[1], index: 3, kind: input, shape index: {}]   ;;  %s429_s4 = inlined_call_operand.hbm [shape: f32[3,128], index: 4, kind: output, shape index: {}]  }
   0x1   :  { %11 = vsyncpa [#allocation7], 0 }
   0x2   :  { %12 = vsyncpa [#allocation5], 0  ;;  %s377_s15 = smov [#allocation6]   ;;  %s378_s17 = smov [#allocation3]  }
   0x3   :  { %s30_s16 = sshll.u32 %s377_s15, 4  ;;  %s18_s18 = sshll.u32 %s378_s17, 4  ;;  %s31_s16 = int_to_ptr.vmem [resolvable:$true] %s30_s16  ;;  %s19_s18 = int_to_ptr.vmem [resolvable:$true] %s18_s18 }
   0x4   :  { %s299_s19 = scalar_lea.vmem %s31_s16, 512  ;;  %p304_p1 = scmp.lt.s32.totalorder %s31_s16, %s31_s16 }
   0x5   :  { %p300_p0 = scmp.ne.s32.totalorder %s31_s16, %s299_s19  ;;  %p305_p2 = scmp.lt.s32.totalorder %s299_s19, %s299_s19 }
   0x7   :  { %p306_p3 = por %p305_p2, %p304_p1 }
   0x9   :  { %p307_p4 = pnand %p306_p3, %p300_p0 }
   0xb   :  { %310 = shalt.err (!%p307_p4)
}
   0xc   :  { %s379_s20 = smov 128   ;;  %s380_s21 = smov 8  }
   0xd   :  { %36 = dma.hbm_to_vmem [thread:$0]  %s426_s1, 512, %s31_s16, [#allocation7], %s379_s20, %s379_s20, %s380_s21  }
   0xe   :  { %s319_s24 = scalar_lea.vmem %s19_s18, 512  ;;  %p324_p6 = scmp.lt.s32.totalorder %s19_s18, %s19_s18 }
   0xf   :  { %p320_p5 = scmp.ne.s32.totalorder %s19_s18, %s319_s24  ;;  %p325_p7 = scmp.lt.s32.totalorder %s319_s24, %s319_s24 }
  0x11   :  { %p326_p8 = por %p325_p7, %p324_p6 }
  0x13   :  { %p327_p9 = pnand %p326_p8, %p320_p5 }
  0x15   :  { %330 = shalt.err (!%p327_p9)
}
  0x16   :  { %24 = dma.hbm_to_vmem [thread:$0]  %s425_s0, 512, %s19_s18, [#allocation4], %s379_s20, %s379_s20, %s380_s21  }
  0x17   :  { %s381_s27 = smov [#allocation8]  }
  0x18   :  { %s42_s28 = sshll.u32 %s381_s27, 4  ;;  %s43_s28 = int_to_ptr.vmem [resolvable:$true] %s42_s28 }
  0x19   :  { %s339_s29 = scalar_lea.vmem %s43_s28, 512  ;;  %p344_p11 = scmp.lt.s32.totalorder %s43_s28, %s43_s28 }
  0x1a   :  { %p340_p10 = scmp.ne.s32.totalorder %s43_s28, %s339_s29  ;;  %p345_p12 = scmp.lt.s32.totalorder %s339_s29, %s339_s29 }
  0x1c   :  { %p346_p13 = por %p345_p12, %p344_p11 }
  0x1e   :  { %p347_p0 = pnand %p346_p13, %p340_p10 }
  0x20   :  { %350 = shalt.err (!%p347_p0)
}
  0x21   :  { %48 = dma.hbm_to_vmem [thread:$0]  %s427_s2, 512, %s43_s28, [#allocation7], %s379_s20, %s379_s20, %s380_s21  }
  0x22   :  { %371 = dma.done.wait [#allocation4], 512  }
  0x23   :  { %372 = vsyncadd [#allocation4], 4294966784 }
  0x24   :  { %373 = dma.done.wait [#allocation7], 1024  }
  0x25   :  { %374 = vsyncadd [#allocation7], 4294966272  ;;  %v67_v0 = vld [vmem:[#allocation3 + $0x18] sm:$0xff]  ;;  %v66_v1 = vld [vmem:[#allocation3 + $0x10] sm:$0xff]  ;;  %vm68_vm0 = vcmask 261120   ;;  %s382_s0 = smov 2   ;;  %v230_v63 = vstv %s428_s3 }
  0x26   :  { %261 = vmatprep.subr.mxu0 %v67_v0  ;;  %275 = vmatprep.subr.mxu1 %v67_v0  ;;  %v65_v2 = vld [vmem:[#allocation3 + $0x8] sm:$0xff]  ;;  %v64_v3 = vld [vmem:[#allocation3] sm:$0xff]  ;;  %v62_v5 = vld [vmem:[#allocation8 + $0x10] sm:$0xff]  ;;  %s383_s2 = smov 1   ;;  %s384_s7 = smov [#allocation9]  }
  0x27   :  { %262 = vmatpush3.msra.mxu0 %v67_v0  ;;  %279 = vmatpush3.msra.mxu1 %v67_v0  ;;  %v60_v4 = vld [vmem:[#allocation8] sm:$0xff]  ;;  %v61_v6 = vld [vmem:[#allocation8 + $0x8] sm:$0xff]  ;;  %v63_v7 = vld [vmem:[#allocation8 + $0x18] sm:$0xff]  ;;  %s239_s8 = sshll.u32 %s384_s7, 4  ;;  %s240_s8 = int_to_ptr.vmem [resolvable:$true] %s239_s8 }
  0x28   :  { %263 = vmatprep.subr.mxu0 %v66_v1  ;;  %276 = vmatprep.subr.mxu1 %v66_v1  ;;  %v166_v8 = vld [vmem:[#allocation6] sm:$0xff]  ;;  %v167_v9 = vld [vmem:[#allocation6 + $0x8] sm:$0xff]  ;;  %v168_v10 = vld [vmem:[#allocation6 + $0x10] sm:$0xff]  ;;  %s351_s9 = scalar_lea.vmem %s240_s8, 64  ;;  %p356_p2 = scmp.lt.s32.totalorder %s240_s8, %s240_s8 }
  0x29   :  { %264 = vmatpush3.msra.mxu0 %v66_v1  ;;  %280 = vmatpush3.msra.mxu1 %v66_v1  ;;  %v169_v11 = vld [vmem:[#allocation6 + $0x18] sm:$0xff]  ;;  %p352_p1 = scmp.ne.s32.totalorder %s240_s8, %s351_s9  ;;  %p357_p3 = scmp.lt.s32.totalorder %s351_s9, %s351_s9 }
  0x2a   :  { %265 = vmatprep.subr.mxu0 %v65_v2  ;;  %277 = vmatprep.subr.mxu1 %v65_v2 }
  0x2b   :  { %266 = vmatpush3.msra.mxu0 %v65_v2  ;;  %281 = vmatpush3.msra.mxu1 %v65_v2  ;;  %p358_p4 = por %p357_p3, %p356_p2 }
  0x2c   :  { %267 = vmatprep.subr.mxu0 %v64_v3  ;;  %278 = vmatprep.subr.mxu1 %v64_v3 }
  0x2d   :  { %268 = vmatpush3.msra.mxu0 %v64_v3  ;;  %282 = vmatpush3.msra.mxu1 %v64_v3  ;;  %p359_p5 = pnand %p358_p4, %p352_p1 }
  0x2e   :  { %269 = vmatprep.mubr.msk.f32.mxu0 %vm68_vm0, %v60_v4  ;;  %272 = vmatprep.mubr.msk.f32.mxu1 %vm68_vm0, %v62_v5 }
  0x2f   :  { %270 = vmatmul.mubr.msk.f32.vlgmr.msra.gmra.mxu0 %vm68_vm0, %v61_v6  ;;  %273 = vmatmul.mubr.msk.f32.vlgmr.msra.gmra.mxu1 %vm68_vm0, %v63_v7 }
  0x30   :  { %206 = vrot.lane.b32.xlu1 %v166_v8, %s382_s0  ;;  %184 = vrot.lane.b32.xlu0 %v166_v8, %s383_s2 }
  0x34   :  { %208 = vrot.lane.b32.xlu1 %v167_v9, %s382_s0  ;;  %186 = vrot.lane.b32.xlu0 %v167_v9, %s383_s2 }
  0x38   :  { %210 = vrot.lane.b32.xlu1 %v168_v10, %s382_s0  ;;  %188 = vrot.lane.b32.xlu0 %v168_v10, %s383_s2 }
  0x3c   :  { %212 = vrot.lane.b32.xlu1 %v169_v11, %s382_s0  ;;  %190 = vrot.lane.b32.xlu0 %v169_v11, %s383_s2 }
  0xa2   :  { %v207_v12 = vpop.permute.xlu1 %206  ;;  %v185_v13 = vpop.permute.xlu0 %184 }
  0xa6   :  { %v209_v14 = vpop.permute.xlu1 %208  ;;  %v187_v15 = vpop.permute.xlu0 %186 }
  0xaa   :  { %v211_v16 = vpop.permute.xlu1 %210  ;;  %v189_v17 = vpop.permute.xlu0 %188 }
  0xae   :  { %v213_v25 = vpop.permute.xlu1 %212  ;;  %v191_v29 = vpop.permute.xlu0 %190 }
  0xef   :  { %v271_v18 = vpop.f32.mrf.mxu0  ;;  %v274_v19 = vpop.f32.mrf.mxu1 }
  0xf0   :  { %v171_v20 = vmul.f32 %v271_v18, %v167_v9  ;;  %v193_v21 = vmul.f32 %v271_v18, %v187_v15  ;;  %v215_v24 = vmul.f32 %v271_v18, %v209_v14  ;;  %v173_v36 = vmul.f32 %v274_v19, %v169_v11 }
  0xf1   :  { %v147_v22 = vpop.f32.mrf.mxu0  ;;  %v157_v23 = vpop.f32.mrf.mxu1  ;;  %v217_v37 = vmul.f32 %v274_v19, %v213_v25  ;;  %v195_v38 = vmul.f32 %v274_v19, %v191_v29 }
  0xf2   :  { %v170_v26 = vmul.f32 %v166_v8, %v147_v22  ;;  %v192_v27 = vmul.f32 %v185_v13, %v147_v22  ;;  %v214_v28 = vmul.f32 %v207_v12, %v147_v22  ;;  %v172_v30 = vmul.f32 %v168_v10, %v157_v23 }
  0xf3   :  { %v194_v31 = vmul.f32 %v189_v17, %v157_v23  ;;  %v216_v35 = vmul.f32 %v211_v16, %v157_v23 }
  0xf4   :  { %v174_v32 = vadd.f32 %v171_v20, %v170_v26  ;;  %v196_v33 = vadd.f32 %v193_v21, %v192_v27  ;;  %v218_v34 = vadd.f32 %v215_v24, %v214_v28 }
  0xf6   :  { %v175_v39 = vadd.f32 %v174_v32, %v172_v30  ;;  %v197_v40 = vadd.f32 %v196_v33, %v194_v31  ;;  %v219_v41 = vadd.f32 %v218_v34, %v216_v35 }
  0xf8   :  { %v176_v42 = vadd.f32 %v175_v39, %v173_v36  ;;  %v198_v43 = vadd.f32 %v197_v40, %v195_v38  ;;  %v220_v44 = vadd.f32 %v219_v41, %v217_v37 }
  0xfa   :  { %v177_v45 = vrot.slane %v176_v42, 4  ;;  %v199_v46 = vrot.slane %v198_v43, 4  ;;  %v221_v47 = vrot.slane %v220_v44, 4 }
  0xfc   :  { %v178_v48 = vadd.f32 %v177_v45, %v176_v42  ;;  %v200_v49 = vadd.f32 %v199_v46, %v198_v43  ;;  %v222_v50 = vadd.f32 %v221_v47, %v220_v44 }
  0xfe   :  { %v179_v51 = vrot.slane %v178_v48, 2  ;;  %v201_v52 = vrot.slane %v200_v49, 2  ;;  %v223_v53 = vrot.slane %v222_v50, 2 }
 0x100   :  { %v180_v54 = vadd.f32 %v179_v51, %v178_v48  ;;  %v202_v55 = vadd.f32 %v201_v52, %v200_v49  ;;  %v224_v56 = vadd.f32 %v223_v53, %v222_v50 }
 0x102   :  { %v181_v57 = vrot.slane %v180_v54, 1  ;;  %v203_v58 = vrot.slane %v202_v55, 1  ;;  %v225_v59 = vrot.slane %v224_v56, 1 }
 0x104   :  { %v182_v60 = vadd.f32 %v181_v57, %v180_v54  ;;  %v204_v61 = vadd.f32 %v203_v58, %v202_v55  ;;  %v226_v62 = vadd.f32 %v225_v59, %v224_v56 }
 0x106   :  { %183 = vst [vmem:[#allocation9] sm:$0x1] %v182_v60  ;;  %205 = vst [vmem:[#allocation9 + $0x1] sm:$0x1] %v204_v61 }
 0x107   :  { %227 = vst [vmem:[#allocation9 + $0x2] sm:$0x1] %v226_v62 }
 0x10e   :  { %v228_v0 = vld [vmem:[#allocation9] sm:$0x7] }
 0x10f   :  { %v231_v1 = vadd.f32 %v230_v63, %v228_v0 }
 0x111   :  { %232 = vst [vmem:[#allocation9] sm:$0x7] %v231_v1 }
 0x112   :  { %362 = shalt.err (!%p359_p5)
}
 0x113   :  { %242 = dma.vmem_to_hbm [thread:$0]  %s240_s8, 64, %s429_s4, [#allocation5]  }
 0x114   :  { %375 = dma.done.wait [#allocation5], 64  }
 0x115   :  { %376 = vsyncadd [#allocation5], 4294967232 }
 0x116   :  { %246 = vsyncpa [#allocation4], 1 }
 0x117   :  { %247 = vsyncpa [#allocation7], 1 }
 0x118   :  { %248 = vsyncpa [#allocation5], 1 }

</bundles_post_ra>
